<compile_context>
chip_gen: v7x
topology: tpu7x:2x2x1
jax: 0.10.0
libtpu: 0.0.40
codegen_flags: <defaults>
</compile_context>

<pallas_src>
import functools

import jax
import jax.numpy as jnp
from jax.experimental import pallas as pl
from jax.experimental.pallas import tpu as pltpu

BN_EPS = 1e-5


def _conv_tile(xs_ref, w01_ref, w2_ref, *, t_rows, wo, cin):
    """3x3/s2 conv for one M-tile as 2 accumulated MXU dots -> (tq, Cout) f32.

    xs_ref : (t_rows, wo+1, 6*cin)  channel order = [col parity | kh | cin]
    w01_ref: (6*cin, cout)          kw=0 (even cols) and kw=1 (odd cols) taps
    w2_ref : (3*cin, cout)          kw=2 tap (even half of the next super-col)
    """
    tq = t_rows * wo
    a01 = xs_ref[:, :wo, :].reshape(tq, 6 * cin)            # kw0/kw1 taps
    y = jnp.dot(a01, w01_ref[...], preferred_element_type=jnp.float32)
    a2 = xs_ref[:, 1:, :3 * cin].reshape(tq, 3 * cin)        # kw2 tap (col shift +1)
    return y + jnp.dot(a2, w2_ref[...], preferred_element_type=jnp.float32)


def _stats_kernel(xs_ref, w01_ref, w2_ref, ps_ref, *, t_rows, wo, cin):
    """Pass 1: per-tile partial BN statistics (sum, sum of squares)."""
    y = _conv_tile(xs_ref, w01_ref, w2_ref, t_rows=t_rows, wo=wo, cin=cin)
    ps_ref[0, 0:1, :] = jnp.sum(y, axis=0, keepdims=True)
    ps_ref[0, 1:2, :] = jnp.sum(y * y, axis=0, keepdims=True)


def _norm_kernel(xs_ref, w01_ref, w2_ref, scale_ref, shift_ref, o_ref, *,
                 t_rows, wo, cin, transpose_out):
    """Pass 2: recompute the conv tile, apply finalized BN scale/shift + ReLU."""
    y = _conv_tile(xs_ref, w01_ref, w2_ref, t_rows=t_rows, wo=wo, cin=cin)
    out = jnp.maximum(y * scale_ref[...] + shift_ref[...], 0.0)
    if transpose_out:
        o_ref[...] = out.T.astype(o_ref.dtype)    # (cout, tq): pixels on lanes
    else:
        o_ref[...] = out.astype(o_ref.dtype)      # (tq, cout): already lane-dense


def _pick_tile_rows(m_rows, wo, target_pixels):
    """Largest T dividing m_rows with a 128-aligned (or full) pixel count."""
    best = None
    for t in range(1, m_rows + 1):
        if m_rows % t:
            continue
        if (t * wo) % 128 != 0 and t != m_rows:
            continue
        if t * wo <= target_pixels and (best is None or t > best):
            best = t
    return best if best is not None else m_rows


def _vmem_budget_bytes():
    """~75% of this generation's physical VMEM (48 MiB v7x, 96 MiB v5e/v6e)."""
    try:
        cap = int(pltpu.get_tpu_info().vmem_capacity_bytes)
    except Exception:
        cap = 64 * 2**20                      # conservative (v7x-sized) fallback
    cap = min(max(cap, 64 * 2**20), 128 * 2**20)
    return int(0.75 * cap)


def conv_block_forward(x_nchw, w_oihw, b, gamma, beta, *, stride=2, padding=1,
                       tile_rows=None, compute_dtype=jnp.bfloat16):
    """ConvBlock forward.  x_nchw: (N, Cin, H, W); w_oihw: (Cout, Cin, 3, 3)."""
    del b  # conv bias cancels exactly under training-mode BatchNorm (y - mean)
    N, Cin, H, W = x_nchw.shape
    Cout, Cin_w, KH, KW = w_oihw.shape
    assert (KH, KW, stride) == (3, 3, 2) and Cin_w == Cin, \
        "kernel specializes the ConvBlock defaults: 3x3 conv, stride 2"
    Ho = (H + 2 * padding - KH) // stride + 1
    Wo = (W + 2 * padding - KW) // stride + 1
    m_rows = N * Ho                 # output image-rows across the batch
    m_total = m_rows * Wo           # output pixels (BN reduction size)
    ws = Wo + 1                     # super-columns needed per output row

    # ---- wrapper glue: cheap reshuffles only (~1.5x input bytes, no im2col) ----
    x = jnp.transpose(x_nchw, (0, 2, 3, 1))                       # NHWC
    hp = max(H + 2 * padding, 2 * Ho + 1)
    wp = max(W + 2 * padding, 2 * ws)
    wp += wp % 2                                                  # even for pairing
    x = jnp.pad(x, ((0, 0), (padding, hp - H - padding),
                    (padding, wp - W - padding), (0, 0)))
    # Per-kh stride-2 row planes: plane kh, row (n*Ho+ho) = padded row 2*ho+kh.
    xk = jnp.stack([x[:, kh:kh + 2 * Ho:2, :, :] for kh in range(3)], axis=0)
    xk = xk.reshape(3, m_rows, wp, Cin)
    # Fold (col parity, kh, cin) into one K axis:
    #   xs[m, c, par*3*Cin + kh*Cin + ci] = x_pad[row 2*ho+kh, col 2*c+par, ci]
    # -> kw0/kw1 is the full 6*Cin slice of super-cols :Wo, kw2 is the leading
    #    3*Cin (even-parity) slice of super-cols 1:.
    xk = xk.reshape(3, m_rows, wp // 2, 2, Cin)                   # (kh, m, c, par, ci)
    xs = jnp.transpose(xk, (1, 2, 3, 0, 4))[:, :ws]               # (m, c, par, kh, ci)
    xs = xs.reshape(m_rows, ws, 6 * Cin).astype(compute_dtype)

    # Packed weights, K order matching xs: (kw, kh, ci).
    wt = jnp.transpose(w_oihw, (3, 2, 1, 0))                      # (kw, kh, ci, co)
    w01 = wt[:2].reshape(6 * Cin, Cout).astype(compute_dtype)     # kw in {0, 1}
    w2 = wt[2].reshape(3 * Cin, Cout).astype(compute_dtype)       # kw = 2

    # ---- tiling over M with a generation-aware VMEM budget ----
    itemsize = jnp.dtype(compute_dtype).itemsize
    ru = lambda v: -(-v // 128) * 128             # lane padding for VMEM accounting
    per_pixel = (3 * ru(6 * Cin) * itemsize                   # xs block (2 bufs + slack)
                 + (ru(6 * Cin) + ru(3 * Cin)) * itemsize     # in-kernel slice copies
                 + 2 * ru(Cout) * 4                           # y / out f32 temporaries
                 + 4 * Cout * 4)                              # output block (2 bufs)
    budget = _vmem_budget_bytes()
    target_pixels = max(128, min(8192, (budget // 2) // per_pixel))
    if tile_rows is None:
        tile_rows = _pick_tile_rows(m_rows, Wo, target_pixels)
    assert m_rows % tile_rows == 0, "tile_rows must divide N*Ho"
    assert (tile_rows * Wo) % 128 == 0 or tile_rows == m_rows
    num_m_tiles = m_rows // tile_rows
    tq = tile_rows * Wo

    cparams = pltpu.CompilerParams(
        dimension_semantics=("parallel",),        # independent M tiles (megacore-safe)
        vmem_limit_bytes=budget)
    xs_spec = pl.BlockSpec((tile_rows, ws, 6 * Cin), lambda m: (m, 0, 0))
    w01_spec = pl.BlockSpec((6 * Cin, Cout), lambda m: (0, 0))
    w2_spec = pl.BlockSpec((3 * Cin, Cout), lambda m: (0, 0))

    # ---- kernel 1: conv + per-tile partial BN statistics ----
    partial = pl.pallas_call(
        functools.partial(_stats_kernel, t_rows=tile_rows, wo=Wo, cin=Cin),
        out_shape=jax.ShapeDtypeStruct((num_m_tiles, 2, Cout), jnp.float32),
        grid=(num_m_tiles,),
        in_specs=[xs_spec, w01_spec, w2_spec],
        out_specs=pl.BlockSpec((1, 2, Cout), lambda m: (m, 0, 0)),
        compiler_params=cparams,
    )(xs, w01, w2)

    # ---- finalize BN scale/shift once (tiny XLA ops) ----
    sums = jnp.sum(partial, axis=0)                               # (2, Cout) f32
    mean = sums[0] / m_total
    # One-pass variance; clamp guards tiny negative values from cancellation.
    var = jnp.maximum(sums[1] / m_total - mean * mean, 0.0)
    scale = gamma.astype(jnp.float32) * jax.lax.rsqrt(var + BN_EPS)
    shift = beta.astype(jnp.float32) - mean * scale

    # ---- kernel 2: conv + scale/shift + ReLU, lane-dense store ----
    transpose_out = Cout < 128         # small Cout: put pixels on the lane axis
    if transpose_out:
        out_shape = (Cout, m_rows * Wo)
        out_spec = pl.BlockSpec((Cout, tq), lambda m: (0, m))
    else:
        out_shape = (m_rows * Wo, Cout)
        out_spec = pl.BlockSpec((tq, Cout), lambda m: (m, 0))
    out_flat = pl.pallas_call(
        functools.partial(_norm_kernel, t_rows=tile_rows, wo=Wo, cin=Cin,
                          transpose_out=transpose_out),
        out_shape=jax.ShapeDtypeStruct(out_shape, jnp.float32),
        grid=(num_m_tiles,),
        in_specs=[xs_spec, w01_spec, w2_spec,
                  pl.BlockSpec((1, Cout), lambda m: (0, 0)),
                  pl.BlockSpec((1, Cout), lambda m: (0, 0))],
        out_specs=out_spec,
        compiler_params=cparams,
    )(xs, w01, w2, scale.reshape(1, Cout), shift.reshape(1, Cout))

    # Back to NCHW; this replaces the layout transpose we'd need anyway.
    if transpose_out:
        return jnp.transpose(out_flat.reshape(Cout, N, Ho, Wo), (1, 0, 2, 3))
    return jnp.transpose(out_flat.reshape(N, Ho, Wo, Cout), (0, 3, 1, 2))


def _reference(x_nchw, w_oihw, b, gamma, beta, *, stride=2, padding=1):
    y = jax.lax.conv_general_dilated(
        x_nchw, w_oihw, window_strides=(stride, stride),
        padding=((padding, padding), (padding, padding)),
        dimension_numbers=("NCHW", "OIHW", "NCHW"))
    y = y + b.reshape(1, -1, 1, 1)
    mean = jnp.mean(y, axis=(0, 2, 3), keepdims=True)
    var = jnp.mean((y - mean) ** 2, axis=(0, 2, 3), keepdims=True)
    y = (y - mean) * jax.lax.rsqrt(var + BN_EPS)
    y = y * gamma.reshape(1, -1, 1, 1) + beta.reshape(1, -1, 1, 1)
    return jnp.maximum(y, 0.0)


if __name__ == "__main__":
    key = jax.random.PRNGKey(0)
    k_x, k_w, k_b, k_g, k_be, k_x2 = jax.random.split(key, 6)

    N, Cin, H, W = 2, 4, 16, 16
    Cout = 8
    x = jax.random.normal(k_x, (N, Cin, H, W), dtype=jnp.float32)
    conv_w = jax.random.normal(k_w, (Cout, Cin, 3, 3), dtype=jnp.float32) * 0.1
    conv_b = jax.random.normal(k_b, (Cout,), dtype=jnp.float32) * 0.1
    bn_gamma = 1.0 + 0.1 * jax.random.normal(k_g, (Cout,), dtype=jnp.float32)
    bn_beta = 0.1 * jax.random.normal(k_be, (Cout,), dtype=jnp.float32)

    # 1) Spec shapes, default bf16 MXU operands (f32 accumulation), auto tile.
    out = jax.block_until_ready(
        conv_block_forward(x, conv_w, conv_b, bn_gamma, bn_beta))
    ref = jax.block_until_ready(_reference(x, conv_w, conv_b, bn_gamma, bn_beta))
    assert out.shape == (N, Cout, H // 2, W // 2)
    assert jnp.allclose(out, ref, atol=5e-2, rtol=5e-2), \
        float(jnp.max(jnp.abs(out - ref)))

    # 2) f32 operands, larger spatial size, forced multi-tile M grid (4 tiles).
    x2 = jax.random.normal(k_x2, (N, Cin, 32, 32), dtype=jnp.float32)
    out2 = jax.block_until_ready(
        conv_block_forward(x2, conv_w, conv_b, bn_gamma, bn_beta,
                           tile_rows=8, compute_dtype=jnp.float32))
    ref2 = jax.block_until_ready(_reference(x2, conv_w, conv_b, bn_gamma, bn_beta))
    assert out2.shape == (N, Cout, 16, 16)
    assert jnp.allclose(out2, ref2, atol=1e-4, rtol=1e-4), \
        float(jnp.max(jnp.abs(out2 - ref2)))

    # 3) Cout >= 128 exercises the non-transposed (already lane-dense) store path.
    Cout3 = 128
    w3 = jax.random.normal(k_w, (Cout3, Cin, 3, 3), dtype=jnp.float32) * 0.1
    b3 = jax.random.normal(k_b, (Cout3,), dtype=jnp.float32) * 0.1
    g3 = jnp.ones((Cout3,), dtype=jnp.float32)
    be3 = jnp.zeros((Cout3,), dtype=jnp.float32)
    out3 = jax.block_until_ready(
        conv_block_forward(x, w3, b3, g3, be3, compute_dtype=jnp.float32))
    ref3 = jax.block_until_ready(_reference(x, w3, b3, g3, be3))
    assert out3.shape == (N, Cout3, H // 2, W // 2)
    assert jnp.allclose(out3, ref3, atol=1e-4, rtol=1e-4), \
        float(jnp.max(jnp.abs(out3 - ref3)))

    print("KERNEL_OK")
</pallas_src>

<mosaic_0001>
module attributes {stable_mosaic.version = 11 : i64} {
  func.func @_stats_kernel(%arg0: i32, %arg1: memref<16x9x24xbf16, #tpu.memory_space<vmem>>, %arg2: memref<24x8xbf16, #tpu.memory_space<vmem>>, %arg3: memref<12x8xbf16, #tpu.memory_space<vmem>>, %arg4: memref<1x2x8xf32, #tpu.memory_space<vmem>>) attributes {dimension_semantics = [#tpu.dimension_semantics<parallel>], iteration_bounds = array<i64: 1>, scalar_prefetch = 0 : i64, scratch_operands = 0 : i64, tpu.core_type = #tpu.core_type<tc>, window_params = [{transform_indices = @transform_0, window_bounds = array<i64: 16, 9, 24>}, {pipeline_mode = #tpu.pipeline_mode<synchronous>, transform_indices = @transform_1, window_bounds = array<i64: 24, 8>}, {pipeline_mode = #tpu.pipeline_mode<synchronous>, transform_indices = @transform_2, window_bounds = array<i64: 12, 8>}, {transform_indices = @transform_3, window_bounds = array<i64: 1, 2, 8>}]} {
    %c0 = arith.constant 0 : index
    %c0_0 = arith.constant 0 : index
    %c0_1 = arith.constant 0 : index
    %0 = vector.load %arg1[%c0, %c0_0, %c0_1] : memref<16x9x24xbf16, #tpu.memory_space<vmem>>, vector<16x8x24xbf16>
    %1 = vector.shape_cast %0 : vector<16x8x24xbf16> to vector<128x24xbf16>
    %c0_2 = arith.constant 0 : index
    %c0_3 = arith.constant 0 : index
    %2 = vector.load %arg2[%c0_2, %c0_3] : memref<24x8xbf16, #tpu.memory_space<vmem>>, vector<24x8xbf16>
    %cst = arith.constant dense<0.000000e+00> : vector<128x8xf32>
    %3 = tpu.matmul %1, %2, %cst {dimension_numbers = #tpu.dot_dimension_numbers<[1], [0], [0], [1], [0, 0, 1, 1], [], []>} : vector<128x24xbf16>, vector<24x8xbf16>, vector<128x8xf32> -> vector<128x8xf32>
    %c0_4 = arith.constant 0 : index
    %c1 = arith.constant 1 : index
    %c0_5 = arith.constant 0 : index
    %4 = vector.load %arg1[%c0_4, %c1, %c0_5] : memref<16x9x24xbf16, #tpu.memory_space<vmem>>, vector<16x8x12xbf16>
    %5 = vector.shape_cast %4 : vector<16x8x12xbf16> to vector<128x12xbf16>
    %c0_6 = arith.constant 0 : index
    %c0_7 = arith.constant 0 : index
    %6 = vector.load %arg3[%c0_6, %c0_7] : memref<12x8xbf16, #tpu.memory_space<vmem>>, vector<12x8xbf16>
    %cst_8 = arith.constant dense<0.000000e+00> : vector<128x8xf32>
    %7 = tpu.matmul %5, %6, %cst_8 {dimension_numbers = #tpu.dot_dimension_numbers<[1], [0], [0], [1], [0, 0, 1, 1], [], []>} : vector<128x12xbf16>, vector<12x8xbf16>, vector<128x8xf32> -> vector<128x8xf32>
    %8 = arith.addf %3, %7 : vector<128x8xf32>
    %cst_9 = arith.constant dense<0.000000e+00> : vector<8xf32>
    %9 = vector.multi_reduction <add>, %8, %cst_9 [0] : vector<128x8xf32> to vector<8xf32>
    %10 = vector.shape_cast %9 : vector<8xf32> to vector<1x8xf32>
    %c0_10 = arith.constant 0 : index
    %c0_11 = arith.constant 0 : index
    %c0_12 = arith.constant 0 : index
    %11 = vector.load %arg4[%c0_10, %c0_11, %c0_12] : memref<1x2x8xf32, #tpu.memory_space<vmem>>, vector<1x1x8xf32>
    %12 = vector.shape_cast %11 : vector<1x1x8xf32> to vector<1x8xf32>
    %13 = vector.shape_cast %10 : vector<1x8xf32> to vector<1x1x8xf32>
    tpu.vector_store %arg4[%c0_10, %c0_11, %c0_12], %13 {strides = array<i32>} : memref<1x2x8xf32, #tpu.memory_space<vmem>>, vector<1x1x8xf32>,
    %14 = arith.mulf %8, %8 : vector<128x8xf32>
    %cst_13 = arith.constant dense<0.000000e+00> : vector<8xf32>
    %15 = vector.multi_reduction <add>, %14, %cst_13 [0] : vector<128x8xf32> to vector<8xf32>
    %16 = vector.shape_cast %15 : vector<8xf32> to vector<1x8xf32>
    %c0_14 = arith.constant 0 : index
    %c1_15 = arith.constant 1 : index
    %c0_16 = arith.constant 0 : index
    %17 = vector.load %arg4[%c0_14, %c1_15, %c0_16] : memref<1x2x8xf32, #tpu.memory_space<vmem>>, vector<1x1x8xf32>
    %18 = vector.shape_cast %17 : vector<1x1x8xf32> to vector<1x8xf32>
    %19 = vector.shape_cast %16 : vector<1x8xf32> to vector<1x1x8xf32>
    tpu.vector_store %arg4[%c0_14, %c1_15, %c0_16], %19 {strides = array<i32>} : memref<1x2x8xf32, #tpu.memory_space<vmem>>, vector<1x1x8xf32>,
    return
  }
  func.func @transform_0(%arg0: i32) -> (i32, i32, i32) {
    %c0_i32 = arith.constant 0 : i32
    %c0_i32_0 = arith.constant 0 : i32
    %c0_i32_1 = arith.constant 0 : i32
    return %arg0, %c0_i32, %c0_i32_0 : i32, i32, i32
  }
  func.func @transform_1(%arg0: i32) -> (i32, i32) {
    %c0_i32 = arith.constant 0 : i32
    %c0_i32_0 = arith.constant 0 : i32
    %c0_i32_1 = arith.constant 0 : i32
    return %c0_i32, %c0_i32_0 : i32, i32
  }
  func.func @transform_2(%arg0: i32) -> (i32, i32) {
    %c0_i32 = arith.constant 0 : i32
    %c0_i32_0 = arith.constant 0 : i32
    %c0_i32_1 = arith.constant 0 : i32
    return %c0_i32, %c0_i32_0 : i32, i32
  }
  func.func @transform_3(%arg0: i32) -> (i32, i32, i32) {
    %c0_i32 = arith.constant 0 : i32
    %c0_i32_0 = arith.constant 0 : i32
    %c0_i32_1 = arith.constant 0 : i32
    return %arg0, %c0_i32, %c0_i32_0 : i32, i32, i32
  }
}

</mosaic_0001>

<bundles_post_ra>
// kernel: tpu_custom_call.1
= control target key start
LH: loop header
LB: loop body
LE: loop exit
PB: predicated region body
PF: predicated region fallthrough
CT: control target
= control target key end

     0   :  { %vm509_vm0 = vcmask 1043456   ;;  %vm334_vm1 = vcmask 1045504   ;;  %vm484_vm2 = vcmask 195584   ;;  %vm309_vm3 = vcmask 97280   ;;  %s1086_s0 = inlined_call_operand.vmem [shape: bf16[16,9,24], index: 0, kind: input, shape index: {}]   ;;  %s1087_s1 = inlined_call_operand.vmem [shape: bf16[24,8], index: 1, kind: input, shape index: {}]   ;;  %s1088_s2 = inlined_call_operand.vmem [shape: bf16[12,8], index: 2, kind: input, shape index: {}]   ;;  %s1089_s3 = inlined_call_operand.hbm [shape: f32[1,2,8], index: 3, kind: output, shape index: {}]  }
   0x1   :  { %v829_v0 = vld [vmem:[%s1087_s1] sm:$0xff]   ;;  %v830_v1 = vld [vmem:[%s1087_s1 + $0x8] ss:$0 sps:$4 sm:$0xff]   ;;  %v18_v10 = vld [vmem:[%s1086_s0 + $0x10] sm:$0xf] }
   0x2   :  { %790 = vmatprep.subr.bf16.mxu0 %v829_v0  ;;  %v831_v2 = vld [vmem:[%s1088_s2] sm:$0x3f]   ;;  %v511_v3 = vsel %vm509_vm0, %v830_v1, 0  ;;  %v17_v5 = vld [vmem:[%s1086_s0 + $0x8] sm:$0xf]  ;;  %v83_v14 = vshrl.u32 %v18_v10, 16 }
   0x3   :  { %791 = vmatpush3.bf16.msra.mxu0 %v829_v0  ;;  %v16_v4 = vld [vmem:[%s1086_s0] sm:$0xf]  ;;  %826 = vmatprep.subr.msk.bf16.mxu1 %vm334_vm1, %v831_v2  ;;  %v336_v6 = vsel %vm334_vm1, %v831_v2, 0  ;;  %v69_v9 = vshrl.u32 %v17_v5, 16  ;;  %v72_v11 = vshll.u32 %v17_v5, 16  ;;  %v86_v15 = vshll.u32 %v18_v10, 16 }
   0x4   :  { %827 = vmatprep.subr.msk.bf16.mxu0 %vm509_vm0, %v830_v1  ;;  %v55_v7 = vshrl.u32 %v16_v4, 16  ;;  %v58_v8 = vshll.u32 %v16_v4, 16  ;;  %773 = vmatpush3.bf16.msra.mxu1 %v336_v6  ;;  %v735_v12 = vcombine.low %v16_v4, %v17_v5  ;;  %v19_v13 = vld [vmem:[%s1086_s0 + $0x18] sm:$0xf]  ;;  %v35_v20 = vld [vmem:[%s1086_s0 + $0x4] sm:$0x1] }
   0x5   :  { %v71_v18 = vrot.slane %v69_v9, 4  ;;  %v97_v19 = vshrl.u32 %v19_v13, 16  ;;  %v74_v21 = vrot.slane %v72_v11, 5  ;;  %v85_v22 = vrot.slane %v83_v14, 4  ;;  %v36_v25 = vld [vmem:[%s1086_s0 + $0xc] sm:$0x1] }
   0x6   :  { %v57_v16 = vrot.slane %v55_v7, 4  ;;  %v60_v17 = vrot.slane %v58_v8, 5  ;;  %794 = vmatprep.mubr.msk.bf16.mxu0 %vm484_vm2, %v735_v12  ;;  %v88_v23 = vrot.slane %v86_v15, 5  ;;  %v100_v24 = vshll.u32 %v19_v13, 16  ;;  %v37_v32 = vld [vmem:[%s1086_s0 + $0x14] sm:$0x1] }
   0x7   :  { %793 = vmatpush3.bf16.msra.mxu0 %v511_v3  ;;  %v99_v26 = vrot.slane %v97_v19, 4  ;;  %v736_v27 = vcombine.low %v18_v10, %v19_v13  ;;  %vm51_vm4 = vsmask.f32 3328  ;;  %vm52_vm5 = vsmask.f32 7440 }
   0x8   :  { %v102_v28 = vrot.slane %v100_v24, 5  ;;  %v61_v29 = vor.u32 %v60_v17, %v57_v16  ;;  %v64_v30 = vshll.u32 %v35_v20, 16  ;;  %v75_v31 = vor.u32 %v74_v21, %v71_v18  ;;  %v38_v33 = vld [vmem:[%s1086_s0 + $0x1c] sm:$0x1]  ;;  %vm920_vm6 = vmor %vm51_vm4, %vm52_vm5  ;;  %v20_v39 = vld [vmem:[%s1086_s0 + $0x20] sm:$0xf] }
   0x9   :  { %v78_v35 = vshll.u32 %v36_v25, 16  ;;  %v89_v36 = vor.u32 %v88_v23, %v85_v22  ;;  %v92_v37 = vshll.u32 %v37_v32, 16  ;;  %v106_v38 = vshll.u32 %v38_v33, 16  ;;  %v21_v44 = vld [vmem:[%s1086_s0 + $0x28] sm:$0xf] }
   0xa   :  { %795 = vmatmul.mubr.msk.bf16.vlgmr.msra.gmra.mrb[0].mxu0 %vm484_vm2, %v736_v27  ;;  %v62_v40 = vrot.slane %v61_v29, 4  ;;  %v66_v41 = vrot.slane %v64_v30, 5  ;;  %v76_v42 = vrot.slane %v75_v31, 4  ;;  %v103_v43 = vor.u32 %v102_v28, %v99_v26  ;;  %v22_v57 = vld [vmem:[%s1086_s0 + $0x30] sm:$0xf] }
   0xb   :  { %v80_v45 = vrot.slane %v78_v35, 5  ;;  %v90_v46 = vrot.slane %v89_v36, 4  ;;  %v94_v47 = vrot.slane %v92_v37, 5  ;;  %v108_v48 = vrot.slane %v106_v38, 5  ;;  %v23_v58 = vld [vmem:[%s1086_s0 + $0x38] sm:$0xf] }
   0xc   :  { %v67_v49 = vsel %vm920_vm6, %v62_v40, %v66_v41  ;;  %v104_v50 = vrot.slane %v103_v43, 4  ;;  %v111_v51 = vshrl.u32 %v20_v39, 16  ;;  %v114_v52 = vshll.u32 %v20_v39, 16  ;;  %v39_v63 = vld [vmem:[%s1086_s0 + $0x24] sm:$0x1] }
   0xd   :  { %v81_v53 = vsel %vm920_vm6, %v76_v42, %v80_v45  ;;  %v95_v54 = vsel %vm920_vm6, %v90_v46, %v94_v47  ;;  %v125_v55 = vshrl.u32 %v21_v44, 16  ;;  %v128_v56 = vshll.u32 %v21_v44, 16  ;;  %v40_v8 = vld [vmem:[%s1086_s0 + $0x2c] sm:$0x1]  ;;  %v41_v13 = vld [vmem:[%s1086_s0 + $0x34] sm:$0x1] }
   0xe   :  { %v718_v59 = vcombine.low %v67_v49, %v81_v53  ;;  %v109_v60 = vsel %vm920_vm6, %v104_v50, %v108_v48  ;;  %v113_v61 = vrot.slane %v111_v51, 4  ;;  %v116_v62 = vrot.slane %v114_v52, 5  ;;  %v42_v14 = vld [vmem:[%s1086_s0 + $0x3c] sm:$0x1]  ;;  %v24_v19 = vld [vmem:[%s1086_s0 + $0x40] sm:$0xf] }
   0xf   :  { %v719_v0 = vcombine.low %v95_v54, %v109_v60  ;;  %v127_v1 = vrot.slane %v125_v55, 4  ;;  %v130_v2 = vrot.slane %v128_v56, 5  ;;  %v737_v3 = vcombine.low %v20_v39, %v21_v44  ;;  %v25_v28 = vld [vmem:[%s1086_s0 + $0x48] sm:$0xf]  ;;  %v26_v38 = vld [vmem:[%s1086_s0 + $0x50] sm:$0xf] }
  0x10   :  { %774 = vmatprep.mubr.msk.bf16.mxu1 %vm309_vm3, %v718_v59  ;;  %v139_v4 = vshrl.u32 %v22_v57, 16  ;;  %v142_v5 = vshll.u32 %v22_v57, 16  ;;  %v153_v6 = vshrl.u32 %v23_v58, 16  ;;  %v156_v7 = vshll.u32 %v23_v58, 16  ;;  %v27_v43 = vld [vmem:[%s1086_s0 + $0x58] sm:$0xf] }
  0x11   :  { %775 = vmatmul.mubr.msk.bf16.vlgmr.msra.gmra.mrb[0].mxu1 %vm309_vm3, %v719_v0  ;;  %798 = vmatprep.mubr.msk.bf16.mxu0 %vm484_vm2, %v737_v3  ;;  %v738_v9 = vcombine.low %v22_v57, %v23_v58  ;;  %v117_v10 = vor.u32 %v116_v62, %v113_v61  ;;  %v120_v11 = vshll.u32 %v39_v63, 16  ;;  %v131_v12 = vor.u32 %v130_v2, %v127_v1  ;;  %v43_v48 = vld [vmem:[%s1086_s0 + $0x44] sm:$0x1]  ;;  %v44_v53 = vld [vmem:[%s1086_s0 + $0x4c] sm:$0x1] }
  0x12   :  { %v141_v15 = vrot.slane %v139_v4, 4  ;;  %v144_v16 = vrot.slane %v142_v5, 5  ;;  %v155_v17 = vrot.slane %v153_v6, 4  ;;  %v158_v18 = vrot.slane %v156_v7, 5  ;;  %v45_v54 = vld [vmem:[%s1086_s0 + $0x54] sm:$0x1] }
  0x13   :  { %799 = vmatmul.mubr.msk.bf16.gmra.mrb[4].mxu0 %vm484_vm2, %v738_v9  ;;  %v118_v20 = vrot.slane %v117_v10, 4  ;;  %v122_v21 = vrot.slane %v120_v11, 5  ;;  %v132_v22 = vrot.slane %v131_v12, 4  ;;  %v134_v23 = vshll.u32 %v40_v8, 16 }
  0x14   :  { %v145_v24 = vor.u32 %v144_v16, %v141_v15  ;;  %v148_v25 = vshll.u32 %v41_v13, 16  ;;  %v159_v26 = vor.u32 %v158_v18, %v155_v17  ;;  %v162_v27 = vshll.u32 %v42_v14, 16 }
  0x15   :  { %v123_v29 = vsel %vm920_vm6, %v118_v20, %v122_v21  ;;  %v136_v30 = vrot.slane %v134_v23, 5  ;;  %v167_v31 = vshrl.u32 %v24_v19, 16  ;;  %v170_v32 = vshll.u32 %v24_v19, 16 }
  0x16   :  { %v146_v33 = vrot.slane %v145_v24, 4  ;;  %v150_v35 = vrot.slane %v148_v25, 5  ;;  %v160_v36 = vrot.slane %v159_v26, 4  ;;  %v164_v37 = vrot.slane %v162_v27, 5 }
  0x17   :  { %v137_v39 = vsel %vm920_vm6, %v132_v22, %v136_v30  ;;  %v169_v40 = vrot.slane %v167_v31, 4  ;;  %v172_v41 = vrot.slane %v170_v32, 5  ;;  %v181_v42 = vshrl.u32 %v25_v28, 16 }
  0x18   :  { %v720_v44 = vcombine.low %v123_v29, %v137_v39  ;;  %v151_v45 = vsel %vm920_vm6, %v146_v33, %v150_v35  ;;  %v165_v46 = vsel %vm920_vm6, %v160_v36, %v164_v37  ;;  %v184_v47 = vshll.u32 %v25_v28, 16 }
  0x19   :  { %v721_v49 = vcombine.low %v151_v45, %v165_v46  ;;  %v183_v50 = vrot.slane %v181_v42, 4  ;;  %v739_v51 = vcombine.low %v24_v19, %v25_v28  ;;  %v195_v52 = vshrl.u32 %v26_v38, 16 }
  0x1a   :  { %778 = vmatprep.mubr.msk.bf16.mxu1 %vm309_vm3, %v720_v44  ;;  %v186_v55 = vrot.slane %v184_v47, 5  ;;  %v198_v56 = vshll.u32 %v26_v38, 16  ;;  %v209_v57 = vshrl.u32 %v27_v43, 16  ;;  %v212_v58 = vshll.u32 %v27_v43, 16 }
  0x1b   :  { %8 = vsyncpa [#allocation3], 0  ;;  %779 = vmatmul.mubr.msk.bf16.gmra.mrb[4].mxu1 %vm309_vm3, %v721_v49  ;;  %802 = vmatprep.mubr.msk.bf16.mxu0 %vm484_vm2, %v739_v51  ;;  %v197_v59 = vrot.slane %v195_v52, 4  ;;  %v740_v60 = vcombine.low %v26_v38, %v27_v43  ;;  %v173_v61 = vor.u32 %v172_v41, %v169_v40  ;;  %v176_v62 = vshll.u32 %v43_v48, 16  ;;  %v46_v63 = vld [vmem:[%s1086_s0 + $0x5c] sm:$0x1] }
  0x1c   :  { %v200_v0 = vrot.slane %v198_v56, 5  ;;  %v211_v1 = vrot.slane %v209_v57, 4  ;;  %v214_v2 = vrot.slane %v212_v58, 5  ;;  %v187_v3 = vor.u32 %v186_v55, %v183_v50  ;;  %v28_v4 = vld [vmem:[%s1086_s0 + $0x60] sm:$0xf] }
  0x1d   :  { %803 = vmatmul.mubr.msk.bf16.gmra.mrb[8].mxu0 %vm484_vm2, %v740_v60  ;;  %v174_v5 = vrot.slane %v173_v61, 4  ;;  %v178_v6 = vrot.slane %v176_v62, 5  ;;  %v190_v7 = vshll.u32 %v44_v53, 16  ;;  %v204_v8 = vshll.u32 %v45_v54, 16  ;;  %v29_v13 = vld [vmem:[%s1086_s0 + $0x68] sm:$0xf] }
  0x1e   :  { %v188_v9 = vrot.slane %v187_v3, 4  ;;  %v201_v10 = vor.u32 %v200_v0, %v197_v59  ;;  %v215_v11 = vor.u32 %v214_v2, %v211_v1  ;;  %v218_v12 = vshll.u32 %v46_v63, 16  ;;  %v30_v22 = vld [vmem:[%s1086_s0 + $0x70] sm:$0xf]  ;;  %v31_v27 = vld [vmem:[%s1086_s0 + $0x78] sm:$0xf] }
  0x1f   :  { %v179_v14 = vsel %vm920_vm6, %v174_v5, %v178_v6  ;;  %v192_v15 = vrot.slane %v190_v7, 5  ;;  %v206_v16 = vrot.slane %v204_v8, 5  ;;  %v223_v17 = vshrl.u32 %v28_v4, 16  ;;  %v47_v32 = vld [vmem:[%s1086_s0 + $0x64] sm:$0x1] }
  0x20   :  { %v202_v18 = vrot.slane %v201_v10, 4  ;;  %v216_v19 = vrot.slane %v215_v11, 4  ;;  %v220_v20 = vrot.slane %v218_v12, 5  ;;  %v226_v21 = vshll.u32 %v28_v4, 16  ;;  %v48_v42 = vld [vmem:[%s1086_s0 + $0x6c] sm:$0x1] }
  0x21   :  { %v193_v23 = vsel %vm920_vm6, %v188_v9, %v192_v15  ;;  %v225_v24 = vrot.slane %v223_v17, 4  ;;  %v237_v25 = vshrl.u32 %v29_v13, 16  ;;  %v240_v26 = vshll.u32 %v29_v13, 16  ;;  %v49_v47 = vld [vmem:[%s1086_s0 + $0x74] sm:$0x1] }
  0x22   :  { %v722_v28 = vcombine.low %v179_v14, %v193_v23  ;;  %v207_v29 = vsel %vm920_vm6, %v202_v18, %v206_v16  ;;  %v221_v30 = vsel %vm920_vm6, %v216_v19, %v220_v20  ;;  %v228_v31 = vrot.slane %v226_v21, 5  ;;  %v50_v48 = vld [vmem:[%s1086_s0 + $0x7c] sm:$0x1]  ;;  %s864_s0 = smov [#allocation2]  }
  0x23   :  { %v723_v33 = vcombine.low %v207_v29, %v221_v30  ;;  %v239_v35 = vrot.slane %v237_v25, 4  ;;  %v242_v36 = vrot.slane %v240_v26, 5  ;;  %v741_v37 = vcombine.low %v28_v4, %v29_v13  ;;  %s710_s22 = sshll.u32 %s864_s0, 4  ;;  %s711_s22 = int_to_ptr.vmem [resolvable:$true] %s710_s22 }
  0x24   :  { %782 = vmatprep.mubr.msk.bf16.mxu1 %vm309_vm3, %v722_v28  ;;  %v251_v38 = vshrl.u32 %v30_v22, 16  ;;  %v254_v39 = vshll.u32 %v30_v22, 16  ;;  %v265_v40 = vshrl.u32 %v31_v27, 16  ;;  %v268_v41 = vshll.u32 %v31_v27, 16  ;;  %s840_s23 = scalar_lea.vmem %s711_s22, 32  ;;  %p845_p1 = scmp.lt.s32.totalorder %s711_s22, %s711_s22 }
  0x25   :  { %783 = vmatmul.mubr.msk.bf16.gmra.mrb[8].mxu1 %vm309_vm3, %v723_v33  ;;  %806 = vmatprep.mubr.msk.bf16.mxu0 %vm484_vm2, %v741_v37  ;;  %v742_v43 = vcombine.low %v30_v22, %v31_v27  ;;  %v229_v44 = vor.u32 %v228_v31, %v225_v24  ;;  %v232_v45 = vshll.u32 %v47_v32, 16  ;;  %v243_v46 = vor.u32 %v242_v36, %v239_v35  ;;  %p841_p0 = scmp.ne.s32.totalorder %s711_s22, %s840_s23  ;;  %p846_p2 = scmp.lt.s32.totalorder %s840_s23, %s840_s23 }
  0x26   :  { %v253_v49 = vrot.slane %v251_v38, 4  ;;  %v256_v50 = vrot.slane %v254_v39, 5  ;;  %v267_v51 = vrot.slane %v265_v40, 4  ;;  %v270_v52 = vrot.slane %v268_v41, 5 }
  0x27   :  { %807 = vmatmul.mubr.msk.bf16.gmra.mrb[12].mxu0 %vm484_vm2, %v742_v43  ;;  %v230_v53 = vrot.slane %v229_v44, 4  ;;  %v234_v54 = vrot.slane %v232_v45, 5  ;;  %v244_v55 = vrot.slane %v243_v46, 4  ;;  %v246_v56 = vshll.u32 %v48_v42, 16  ;;  %p847_p3 = por %p846_p2, %p845_p1 }
  0x28   :  { %v257_v57 = vor.u32 %v256_v50, %v253_v49  ;;  %v260_v58 = vshll.u32 %v49_v47, 16  ;;  %v271_v59 = vor.u32 %v270_v52, %v267_v51  ;;  %v274_v60 = vshll.u32 %v50_v48, 16 }
  0x29   :  { %v235_v61 = vsel %vm920_vm6, %v230_v53, %v234_v54  ;;  %v248_v62 = vrot.slane %v246_v56, 5  ;;  %vm610_vm7 = vcmask 64512   ;;  %vm648_vm8 = vcmask 57344   ;;  %p848_p4 = pnand %p847_p3, %p841_p0 }
  0x2a   :  { %v258_v63 = vrot.slane %v257_v57, 4  ;;  %v262_v0 = vrot.slane %v260_v58, 5  ;;  %v272_v1 = vrot.slane %v271_v59, 4  ;;  %v276_v2 = vrot.slane %v274_v60, 5 }
  0x2b   :  { %v249_v3 = vsel %vm920_vm6, %v244_v55, %v248_v62 }
  0x2c   :  { %v724_v4 = vcombine.low %v235_v61, %v249_v3  ;;  %v263_v5 = vsel %vm920_vm6, %v258_v63, %v262_v0  ;;  %v277_v6 = vsel %vm920_vm6, %v272_v1, %v276_v2 }
  0x2d   :  { %v725_v7 = vcombine.low %v263_v5, %v277_v6 }
  0x2e   :  { %786 = vmatprep.mubr.msk.bf16.mxu1 %vm309_vm3, %v724_v4 }
  0x2f   :  { %787 = vmatmul.mubr.msk.bf16.gmra.mrb[12].mxu1 %vm309_vm3, %v725_v7 }
  0xdd   :  { %v796_v8 = vpop.f32.mrb[0].mxu0 }
  0xde   :  { %v547_v9 = vpop.f32.mrb[1].mxu0 }
  0xdf   :  { %v797_v10 = vpop.f32.mrb[2].mxu0 }
  0xe0   :  { %v550_v11 = vpop.f32.mrb[3].mxu0 }
  0xe4   :  { %v776_v12 = vpop.f32.mrb[0].mxu1 }
  0xe5   :  { %v556_v13 = vadd.f32 %v796_v8, %v776_v12  ;;  %v372_v14 = vpop.f32.mrb[1].mxu1 }
  0xe6   :  { %v548_v15 = vadd.f32 %v547_v9, %v372_v14  ;;  %v777_v16 = vpop.f32.mrb[2].mxu1  ;;  %v800_v17 = vpop.f32.mrb[4].mxu0 }
  0xe7   :  { %v559_v18 = vadd.f32 %v797_v10, %v777_v16  ;;  %v375_v19 = vpop.f32.mrb[3].mxu1  ;;  %v563_v34 = vpop.f32.mrb[5].mxu0  ;;  %v652_v24 = vmul.f32 %v556_v13, %v556_v13  ;;  %v614_v29 = vsel %vm610_vm7, %v556_v13, 0.0 }
  0xe8   :  { %v650_v20 = vmul.f32 %v548_v15, %v548_v15  ;;  %v551_v21 = vadd.f32 %v550_v11, %v375_v19  ;;  %v801_v22 = vpop.f32.mrb[6].mxu0  ;;  %v611_v25 = vsel %vm610_vm7, %v548_v15, 0.0 }
  0xe9   :  { %v566_v23 = vpop.f32.mrb[7].mxu0  ;;  %v653_v31 = vmul.f32 %v559_v18, %v559_v18  ;;  %v669_v36 = vsel %vm610_vm7, %v652_v24, 0.0  ;;  %v616_v37 = vsel %vm610_vm7, %v559_v18, 0.0 }
  0xea   :  { %v612_v26 = vsel %vm610_vm7, %v551_v21, 0.0  ;;  %v651_v27 = vmul.f32 %v551_v21, %v551_v21  ;;  %v666_v30 = vsel %vm610_vm7, %v650_v20, 0.0 }
  0xeb   :  { %v613_v28 = vadd.f32 %v612_v26, %v611_v25  ;;  %v671_v43 = vsel %vm610_vm7, %v653_v31, 0.0 }
  0xec   :  { %v667_v32 = vsel %vm610_vm7, %v651_v27, 0.0 }
  0xed   :  { %v615_v33 = vadd.f32 %v614_v29, %v613_v28  ;;  %v668_v35 = vadd.f32 %v667_v32, %v666_v30 }
  0xee   :  { %v780_v38 = vpop.f32.mrb[4].mxu1 }
  0xef   :  { %v670_v39 = vadd.f32 %v669_v36, %v668_v35  ;;  %v572_v40 = vadd.f32 %v800_v17, %v780_v38  ;;  %v388_v41 = vpop.f32.mrb[5].mxu1  ;;  %v617_v42 = vadd.f32 %v616_v37, %v615_v33 }
  0xf0   :  { %v564_v44 = vadd.f32 %v563_v34, %v388_v41  ;;  %v781_v45 = vpop.f32.mrb[6].mxu1  ;;  %v804_v46 = vpop.f32.mrb[8].mxu0 }
  0xf1   :  { %v672_v47 = vadd.f32 %v671_v43, %v670_v39  ;;  %v575_v48 = vadd.f32 %v801_v22, %v781_v45  ;;  %v391_v49 = vpop.f32.mrb[7].mxu1  ;;  %v579_v50 = vpop.f32.mrb[9].mxu0  ;;  %v656_v57 = vmul.f32 %v572_v40, %v572_v40  ;;  %v622_v63 = vsel %vm610_vm7, %v572_v40, 0.0 }
  0xf2   :  { %v618_v51 = vsel %vm610_vm7, %v564_v44, 0.0  ;;  %v654_v52 = vmul.f32 %v564_v44, %v564_v44  ;;  %v567_v53 = vadd.f32 %v566_v23, %v391_v49  ;;  %v805_v54 = vpop.f32.mrb[10].mxu0 }
  0xf3   :  { %v619_v55 = vadd.f32 %v618_v51, %v617_v42  ;;  %v582_v56 = vpop.f32.mrb[11].mxu0  ;;  %v657_v0 = vmul.f32 %v575_v48, %v575_v48  ;;  %v677_v4 = vsel %vm610_vm7, %v656_v57, 0.0  ;;  %v624_v5 = vsel %vm610_vm7, %v575_v48, 0.0 }
  0xf4   :  { %v673_v58 = vsel %vm610_vm7, %v654_v52, 0.0  ;;  %v620_v59 = vsel %vm610_vm7, %v567_v53, 0.0  ;;  %v655_v60 = vmul.f32 %v567_v53, %v567_v53 }
  0xf5   :  { %v674_v61 = vadd.f32 %v673_v58, %v672_v47  ;;  %v621_v62 = vadd.f32 %v620_v59, %v619_v55  ;;  %v679_v11 = vsel %vm610_vm7, %v657_v0, 0.0 }
  0xf6   :  { %v675_v1 = vsel %vm610_vm7, %v655_v60, 0.0 }
  0xf7   :  { %v623_v2 = vadd.f32 %v622_v63, %v621_v62  ;;  %v676_v3 = vadd.f32 %v675_v1, %v674_v61 }
  0xf8   :  { %v784_v6 = vpop.f32.mrb[8].mxu1 }
  0xf9   :  { %v678_v7 = vadd.f32 %v677_v4, %v676_v3  ;;  %v588_v8 = vadd.f32 %v804_v46, %v784_v6  ;;  %v404_v9 = vpop.f32.mrb[9].mxu1  ;;  %v625_v10 = vadd.f32 %v624_v5, %v623_v2 }
  0xfa   :  { %v580_v12 = vadd.f32 %v579_v50, %v404_v9  ;;  %v785_v13 = vpop.f32.mrb[10].mxu1  ;;  %v808_v14 = vpop.f32.mrb[12].mxu0 }
  0xfb   :  { %v680_v15 = vadd.f32 %v679_v11, %v678_v7  ;;  %v591_v16 = vadd.f32 %v805_v54, %v785_v13  ;;  %v407_v17 = vpop.f32.mrb[11].mxu1  ;;  %v595_v18 = vpop.f32.mrb[13].mxu0  ;;  %v660_v24 = vmul.f32 %v588_v8, %v588_v8  ;;  %v630_v30 = vsel %vm610_vm7, %v588_v8, 0.0 }
  0xfc   :  { %v626_v19 = vsel %vm610_vm7, %v580_v12, 0.0  ;;  %v658_v34 = vmul.f32 %v580_v12, %v580_v12  ;;  %v583_v20 = vadd.f32 %v582_v56, %v407_v17  ;;  %v809_v21 = vpop.f32.mrb[14].mxu0 }
  0xfd   :  { %v627_v22 = vadd.f32 %v626_v19, %v625_v10  ;;  %v598_v23 = vpop.f32.mrb[15].mxu0  ;;  %v661_v31 = vmul.f32 %v591_v16, %v591_v16  ;;  %v685_v36 = vsel %vm610_vm7, %v660_v24, 0.0  ;;  %v632_v37 = vsel %vm610_vm7, %v591_v16, 0.0 }
  0xfe   :  { %v681_v25 = vsel %vm610_vm7, %v658_v34, 0.0  ;;  %v628_v26 = vsel %vm610_vm7, %v583_v20, 0.0  ;;  %v659_v27 = vmul.f32 %v583_v20, %v583_v20 }
  0xff   :  { %v682_v28 = vadd.f32 %v681_v25, %v680_v15  ;;  %v629_v29 = vadd.f32 %v628_v26, %v627_v22  ;;  %v687_v43 = vsel %vm610_vm7, %v661_v31, 0.0 }
 0x100   :  { %v683_v32 = vsel %vm610_vm7, %v659_v27, 0.0 }
 0x101   :  { %v631_v33 = vadd.f32 %v630_v30, %v629_v29  ;;  %v684_v35 = vadd.f32 %v683_v32, %v682_v28 }
 0x102   :  { %v788_v38 = vpop.f32.mrb[12].mxu1 }
 0x103   :  { %v686_v39 = vadd.f32 %v685_v36, %v684_v35  ;;  %v604_v40 = vadd.f32 %v808_v14, %v788_v38  ;;  %v420_v41 = vpop.f32.mrb[13].mxu1  ;;  %v633_v42 = vadd.f32 %v632_v37, %v631_v33 }
 0x104   :  { %v596_v44 = vadd.f32 %v595_v18, %v420_v41  ;;  %v789_v45 = vpop.f32.mrb[14].mxu1 }
 0x105   :  { %v688_v46 = vadd.f32 %v687_v43, %v686_v39  ;;  %v607_v47 = vadd.f32 %v809_v21, %v789_v45  ;;  %v423_v48 = vpop.f32.mrb[15].mxu1  ;;  %v664_v53 = vmul.f32 %v604_v40, %v604_v40  ;;  %v638_v59 = vsel %vm610_vm7, %v604_v40, 0.0 }
 0x106   :  { %v634_v49 = vsel %vm610_vm7, %v596_v44, 0.0  ;;  %v662_v50 = vmul.f32 %v596_v44, %v596_v44  ;;  %v599_v51 = vadd.f32 %v598_v23, %v423_v48 }
 0x107   :  { %v635_v52 = vadd.f32 %v634_v49, %v633_v42  ;;  %v665_v60 = vmul.f32 %v607_v47, %v607_v47  ;;  %v693_v0 = vsel %vm610_vm7, %v664_v53, 0.0  ;;  %v640_v1 = vsel %vm610_vm7, %v607_v47, 0.0 }
 0x108   :  { %v689_v54 = vsel %vm610_vm7, %v662_v50, 0.0  ;;  %v636_v55 = vsel %vm610_vm7, %v599_v51, 0.0  ;;  %v663_v56 = vmul.f32 %v599_v51, %v599_v51 }
 0x109   :  { %v690_v57 = vadd.f32 %v689_v54, %v688_v46  ;;  %v637_v58 = vadd.f32 %v636_v55, %v635_v52  ;;  %v695_v4 = vsel %vm610_vm7, %v665_v60, 0.0 }
 0x10a   :  { %v691_v61 = vsel %vm610_vm7, %v663_v56, 0.0 }
 0x10b   :  { %v639_v62 = vadd.f32 %v638_v59, %v637_v58  ;;  %v692_v63 = vadd.f32 %v691_v61, %v690_v57 }
 0x10d   :  { %v641_v2 = vadd.f32 %v640_v1, %v639_v62  ;;  %v694_v3 = vadd.f32 %v693_v0, %v692_v63 }
 0x10f   :  { %v642_v5 = vrot.slane %v641_v2, 4  ;;  %v696_v6 = vadd.f32 %v695_v4, %v694_v3 }
 0x111   :  { %v643_v7 = vadd.f32 %v642_v5, %v641_v2  ;;  %v697_v8 = vrot.slane %v696_v6, 4 }
 0x113   :  { %v644_v9 = vrot.slane %v643_v7, 2  ;;  %v698_v10 = vadd.f32 %v697_v8, %v696_v6 }
 0x115   :  { %v645_v11 = vadd.f32 %v644_v9, %v643_v7  ;;  %v699_v12 = vrot.slane %v698_v10, 2 }
 0x117   :  { %v646_v13 = vrot.slane %v645_v11, 1  ;;  %v700_v14 = vadd.f32 %v699_v12, %v698_v10 }
 0x119   :  { %v647_v15 = vadd.f32 %v646_v13, %v645_v11  ;;  %v701_v16 = vrot.slane %v700_v14, 1 }
 0x11b   :  { %649 = vst.msk [vmem:[#allocation2] sm:$0x1] %vm648_vm8, %v647_v15  ;;  %v702_v17 = vadd.f32 %v701_v16, %v700_v14 }
 0x11d   :  { %703 = vst.msk [vmem:[#allocation2 + $0x1] sm:$0x1] %vm648_vm8, %v702_v17 }
 0x11e   :  { %851 = shalt.err (!%p848_p4)
}
 0x11f   :  { %s852_s26 = scalar_lea.hbm %s1089_s3, 32 }
 0x120   :  { %p853_p5 = scmp.ne.s32.totalorder %s1089_s3, %s852_s26  ;;  %p856_p6 = scmp.lt.u32.totalorder %s852_s26, %s1089_s3 }
 0x122   :  { %p858_p7 = pnand %p856_p6, %p853_p5 }
 0x124   :  { %861 = shalt.err (!%p858_p7)
}
 0x125   :  { %713 = dma.vmem_to_hbm [thread:$0]  %s711_s22, 32, %s1089_s3, [#allocation3]  }
 0x126   :  { %862 = dma.done.wait [#allocation3], 32  }
 0x127   :  { %863 = vsyncadd [#allocation3], 4294967264 }
 0x128   :  { %717 = vsyncpa [#allocation3], 1 }

</bundles_post_ra>
